<compile_context>
chip_gen: v7x
topology: tpu7x:2x2x1
jax: 0.10.0
libtpu: 0.0.40
codegen_flags: <defaults>
</compile_context>

<pallas_src>
import functools

import jax
import jax.numpy as jnp
from jax import lax
from jax.experimental import pallas as pl
from jax.experimental.pallas import tpu as pltpu

_LANES = 128
_SUBLANES = 8
_MAX_BLOCK_ROWS = 2048  # 2048 * 128 * 4B = 1 MiB per input block


def _rloss_kernel(y_ref, t_ref, o_ref, *,
                  tail_rows, block_rows, needs_mask, ncores, inner):
    """Grid: (core, row-block).  o_ref is a per-core (1, 3, 8, 128) partial-sum
    slab that stays resident in VMEM across the inner (arbitrary) axis:
      o[0,0] = partial sums of (t - y)^2
      o[0,1] = partial sums of t
      o[0,2] = partial sums of t^2
    The cross-lane reduction and the final divide happen in the JAX wrapper.
    """
    c = pl.program_id(0)
    i = pl.program_id(1)

    @pl.when(i == 0)
    def _init():
        o_ref[...] = jnp.zeros_like(o_ref)

    r8 = block_rows // _SUBLANES

    def accumulate(t, y):
        d = t - y
        # (block_rows,128) -> (r8,8,128); axis-0 reduce = pure VPU vreg adds.
        o_ref[0, 0] += jnp.sum((d * d).reshape(r8, _SUBLANES, _LANES), axis=0)
        o_ref[0, 1] += jnp.sum(t.reshape(r8, _SUBLANES, _LANES), axis=0)
        o_ref[0, 2] += jnp.sum((t * t).reshape(r8, _SUBLANES, _LANES), axis=0)

    if needs_mask:
        # Only the globally-last row-block is ragged (Pallas pads it with
        # undefined rows); every other step takes the unmasked fast path.
        is_last = jnp.logical_and(c == ncores - 1, i == inner - 1)

        @pl.when(jnp.logical_not(is_last))
        def _fast():
            accumulate(t_ref[...].astype(jnp.float32),
                       y_ref[...].astype(jnp.float32))

        @pl.when(is_last)
        def _tail():
            t = t_ref[...].astype(jnp.float32)
            y = y_ref[...].astype(jnp.float32)
            row_ids = lax.broadcasted_iota(jnp.int32, t.shape, 0)
            valid = row_ids < tail_rows  # static bound; zeros are exact
            accumulate(jnp.where(valid, t, 0.0), jnp.where(valid, y, 0.0))
    else:
        accumulate(t_ref[...].astype(jnp.float32),
                   y_ref[...].astype(jnp.float32))


def rloss_pallas(y_hat, target):
    """Equivalent of RLoss.forward(y_hat, target); returns a float32 scalar."""
    assert y_hat.shape == target.shape
    n_true = int(target.size)

    # Flatten (free for contiguous arrays); keep native dtype (cast in-kernel).
    flat_y = jnp.ravel(y_hat)
    flat_t = jnp.ravel(target)

    # Pad to a whole (8,128) vreg tile with zeros only when needed (zeros are
    # exact for all three sums; the mean uses n_true).  No copy when aligned.
    tile = _SUBLANES * _LANES
    rem = n_true % tile
    if rem:
        pad = tile - rem
        flat_y = jnp.pad(flat_y, (0, pad))
        flat_t = jnp.pad(flat_t, (0, pad))

    rows = flat_t.shape[0] // _LANES  # multiple of 8 by construction
    y2d = flat_y.reshape(rows, _LANES)
    t2d = flat_t.reshape(rows, _LANES)

    block_rows = min(rows, _MAX_BLOCK_ROWS)  # multiple of 8 either way
    grid_rows = pl.cdiv(rows, block_rows)

    # v7x: split the row-blocks across the two TensorCores when they divide
    # evenly; on 1-TC chips the leading axis just iterates sequentially.
    ncores = 2 if (grid_rows >= 2 and grid_rows % 2 == 0) else 1
    inner = grid_rows // ncores

    tail_rows = rows - (grid_rows - 1) * block_rows
    needs_mask = tail_rows != block_rows

    kernel = functools.partial(
        _rloss_kernel,
        tail_rows=tail_rows,
        block_rows=block_rows,
        needs_mask=needs_mask,
        ncores=ncores,
        inner=inner,
    )

    partials = pl.pallas_call(
        kernel,
        out_shape=jax.ShapeDtypeStruct((ncores, 3, _SUBLANES, _LANES),
                                       jnp.float32),
        grid_spec=pltpu.PrefetchScalarGridSpec(
            num_scalar_prefetch=0,
            grid=(ncores, inner),
            in_specs=[
                pl.BlockSpec((block_rows, _LANES),
                             lambda c, i: (c * inner + i, 0)),
                pl.BlockSpec((block_rows, _LANES),
                             lambda c, i: (c * inner + i, 0)),
            ],
            out_specs=pl.BlockSpec((1, 3, _SUBLANES, _LANES),
                                   lambda c, i: (c, 0, 0, 0)),
        ),
        compiler_params=pltpu.CompilerParams(
            dimension_semantics=("parallel", "arbitrary"),
        ),
    )(y2d, t2d)

    # Tiny epilogue in plain JAX: reduce 3 x (ncores,8,128) partials to scalars.
    sums = jnp.sum(partials, axis=(0, 2, 3))  # [sum_reg, sum_t, sum_t2]
    sum_reg, s_t, s_t2 = sums[0], sums[1], sums[2]
    # sum((t - mean(t))^2) = sum(t^2) - (sum t)^2 / n
    sum_tot = s_t2 - (s_t * s_t) / jnp.float32(n_true)
    return sum_reg / sum_tot


def rloss_reference(y_hat, target):
    """Pure-JAX reference mirroring the PyTorch module exactly."""
    sum_reg = jnp.sum(jnp.square(target - y_hat))
    sum_tot = jnp.sum(jnp.square(target - jnp.mean(target)))
    return sum_reg / sum_tot


if __name__ == "__main__":
    key = jax.random.PRNGKey(0)
    k1, k2 = jax.random.split(key)
    # NCHW-shaped inputs, as a regression model output vs. target would be.
    shape = (2, 4, 16, 16)
    y_hat = jax.random.normal(k1, shape, dtype=jnp.float32)
    target = jax.random.normal(k2, shape, dtype=jnp.float32)

    loss = jax.block_until_ready(rloss_pallas(y_hat, target))
    ref = jax.block_until_ready(rloss_reference(y_hat, target))

    assert jnp.allclose(loss, ref, rtol=1e-5, atol=1e-5), (loss, ref)
    print("KERNEL_OK")
</pallas_src>

<mosaic_0001>
module attributes {stable_mosaic.version = 11 : i64} {
  func.func @_rloss_kernel(%arg0: i32, %arg1: i32, %arg2: memref<16x128xf32, #tpu.memory_space<vmem>>, %arg3: memref<16x128xf32, #tpu.memory_space<vmem>>, %arg4: memref<1x3x8x128xf32, #tpu.memory_space<vmem>>) attributes {dimension_semantics = [#tpu.dimension_semantics<parallel>, #tpu.dimension_semantics<arbitrary>], iteration_bounds = array<i64: 1, 1>, scalar_prefetch = 0 : i64, scratch_operands = 0 : i64, tpu.core_type = #tpu.core_type<tc>, window_params = [{transform_indices = @transform_0, window_bounds = array<i64: 16, 128>}, {transform_indices = @transform_1, window_bounds = array<i64: 16, 128>}, {transform_indices = @transform_2, window_bounds = array<i64: 1, 3, 8, 128>}]} {
    %c0_i32 = arith.constant 0 : i32
    %0 = arith.cmpi eq, %arg1, %c0_i32 : i32
    %1 = arith.extui %0 : i1 to i32
    %c0_i32_0 = arith.constant 0 : i32
    %2 = arith.cmpi ne, %1, %c0_i32_0 : i32
    scf.if %2 {
      %cst_28 = arith.constant 0.000000e+00 : f32
      %32 = vector.broadcast %cst_28 : f32 to vector<1x3x8x128xf32>
      %c0_29 = arith.constant 0 : index
      %c0_30 = arith.constant 0 : index
      %c0_31 = arith.constant 0 : index
      %c0_32 = arith.constant 0 : index
      %33 = vector.load %arg4[%c0_29, %c0_30, %c0_31, %c0_32] : memref<1x3x8x128xf32, #tpu.memory_space<vmem>>, vector<1x3x8x128xf32>
      tpu.vector_store %arg4[%c0_29, %c0_30, %c0_31, %c0_32], %32 {strides = array<i32>} : memref<1x3x8x128xf32, #tpu.memory_space<vmem>>, vector<1x3x8x128xf32>,
    } else {
    }
    %c0 = arith.constant 0 : index
    %c0_1 = arith.constant 0 : index
    %3 = vector.load %arg3[%c0, %c0_1] : memref<16x128xf32, #tpu.memory_space<vmem>>, vector<16x128xf32>
    %c0_2 = arith.constant 0 : index
    %c0_3 = arith.constant 0 : index
    %4 = vector.load %arg2[%c0_2, %c0_3] : memref<16x128xf32, #tpu.memory_space<vmem>>, vector<16x128xf32>
    %5 = arith.subf %3, %4 : vector<16x128xf32>
    %c0_4 = arith.constant 0 : index
    %c0_5 = arith.constant 0 : index
    %c0_6 = arith.constant 0 : index
    %c0_7 = arith.constant 0 : index
    %6 = vector.load %arg4[%c0_4, %c0_5, %c0_6, %c0_7] : memref<1x3x8x128xf32, #tpu.memory_space<vmem>>, vector<1x1x8x128xf32>
    %7 = vector.shape_cast %6 : vector<1x1x8x128xf32> to vector<8x128xf32>
    %8 = arith.mulf %5, %5 : vector<16x128xf32>
    %9 = vector.shape_cast %8 : vector<16x128xf32> to vector<2x8x128xf32>
    %cst = arith.constant dense<0.000000e+00> : vector<8x128xf32>
    %10 = vector.multi_reduction <add>, %9, %cst [0] : vector<2x8x128xf32> to vector<8x128xf32>
    %11 = arith.addf %7, %10 : vector<8x128xf32>
    %c0_8 = arith.constant 0 : index
    %c0_9 = arith.constant 0 : index
    %c0_10 = arith.constant 0 : index
    %c0_11 = arith.constant 0 : index
    %12 = vector.load %arg4[%c0_8, %c0_9, %c0_10, %c0_11] : memref<1x3x8x128xf32, #tpu.memory_space<vmem>>, vector<1x1x8x128xf32>
    %13 = vector.shape_cast %12 : vector<1x1x8x128xf32> to vector<8x128xf32>
    %14 = vector.shape_cast %11 : vector<8x128xf32> to vector<1x1x8x128xf32>
    tpu.vector_store %arg4[%c0_8, %c0_9, %c0_10, %c0_11], %14 {strides = array<i32>} : memref<1x3x8x128xf32, #tpu.memory_space<vmem>>, vector<1x1x8x128xf32>,
    %c0_12 = arith.constant 0 : index
    %c1 = arith.constant 1 : index
    %c0_13 = arith.constant 0 : index
    %c0_14 = arith.constant 0 : index
    %15 = vector.load %arg4[%c0_12, %c1, %c0_13, %c0_14] : memref<1x3x8x128xf32, #tpu.memory_space<vmem>>, vector<1x1x8x128xf32>
    %16 = vector.shape_cast %15 : vector<1x1x8x128xf32> to vector<8x128xf32>
    %17 = vector.shape_cast %3 : vector<16x128xf32> to vector<2x8x128xf32>
    %cst_15 = arith.constant dense<0.000000e+00> : vector<8x128xf32>
    %18 = vector.multi_reduction <add>, %17, %cst_15 [0] : vector<2x8x128xf32> to vector<8x128xf32>
    %19 = arith.addf %16, %18 : vector<8x128xf32>
    %c0_16 = arith.constant 0 : index
    %c1_17 = arith.constant 1 : index
    %c0_18 = arith.constant 0 : index
    %c0_19 = arith.constant 0 : index
    %20 = vector.load %arg4[%c0_16, %c1_17, %c0_18, %c0_19] : memref<1x3x8x128xf32, #tpu.memory_space<vmem>>, vector<1x1x8x128xf32>
    %21 = vector.shape_cast %20 : vector<1x1x8x128xf32> to vector<8x128xf32>
    %22 = vector.shape_cast %19 : vector<8x128xf32> to vector<1x1x8x128xf32>
    tpu.vector_store %arg4[%c0_16, %c1_17, %c0_18, %c0_19], %22 {strides = array<i32>} : memref<1x3x8x128xf32, #tpu.memory_space<vmem>>, vector<1x1x8x128xf32>,
    %c0_20 = arith.constant 0 : index
    %c2 = arith.constant 2 : index
    %c0_21 = arith.constant 0 : index
    %c0_22 = arith.constant 0 : index
    %23 = vector.load %arg4[%c0_20, %c2, %c0_21, %c0_22] : memref<1x3x8x128xf32, #tpu.memory_space<vmem>>, vector<1x1x8x128xf32>
    %24 = vector.shape_cast %23 : vector<1x1x8x128xf32> to vector<8x128xf32>
    %25 = arith.mulf %3, %3 : vector<16x128xf32>
    %26 = vector.shape_cast %25 : vector<16x128xf32> to vector<2x8x128xf32>
    %cst_23 = arith.constant dense<0.000000e+00> : vector<8x128xf32>
    %27 = vector.multi_reduction <add>, %26, %cst_23 [0] : vector<2x8x128xf32> to vector<8x128xf32>
    %28 = arith.addf %24, %27 : vector<8x128xf32>
    %c0_24 = arith.constant 0 : index
    %c2_25 = arith.constant 2 : index
    %c0_26 = arith.constant 0 : index
    %c0_27 = arith.constant 0 : index
    %29 = vector.load %arg4[%c0_24, %c2_25, %c0_26, %c0_27] : memref<1x3x8x128xf32, #tpu.memory_space<vmem>>, vector<1x1x8x128xf32>
    %30 = vector.shape_cast %29 : vector<1x1x8x128xf32> to vector<8x128xf32>
    %31 = vector.shape_cast %28 : vector<8x128xf32> to vector<1x1x8x128xf32>
    tpu.vector_store %arg4[%c0_24, %c2_25, %c0_26, %c0_27], %31 {strides = array<i32>} : memref<1x3x8x128xf32, #tpu.memory_space<vmem>>, vector<1x1x8x128xf32>,
    return
  }
  func.func @transform_0(%arg0: i32, %arg1: i32) -> (i32, i32) {
    %c1_i32 = arith.constant 1 : i32
    %0 = arith.muli %arg0, %c1_i32 : i32
    %1 = arith.addi %0, %arg1 : i32
    %c0_i32 = arith.constant 0 : i32
    %c0_i32_0 = arith.constant 0 : i32
    return %1, %c0_i32 : i32, i32
  }
  func.func @transform_1(%arg0: i32, %arg1: i32) -> (i32, i32) {
    %c1_i32 = arith.constant 1 : i32
    %0 = arith.muli %arg0, %c1_i32 : i32
    %1 = arith.addi %0, %arg1 : i32
    %c0_i32 = arith.constant 0 : i32
    %c0_i32_0 = arith.constant 0 : i32
    return %1, %c0_i32 : i32, i32
  }
  func.func @transform_2(%arg0: i32, %arg1: i32) -> (i32, i32, i32, i32) {
    %c0_i32 = arith.constant 0 : i32
    %c0_i32_0 = arith.constant 0 : i32
    %c0_i32_1 = arith.constant 0 : i32
    %c0_i32_2 = arith.constant 0 : i32
    return %arg0, %c0_i32, %c0_i32_0, %c0_i32_1 : i32, i32, i32, i32
  }
}

</mosaic_0001>

<bundles_post_ra>
// kernel: tpu_custom_call.1
= control target key start
LH: loop header
LB: loop body
LE: loop exit
PB: predicated region body
PF: predicated region fallthrough
CT: control target
= control target key end

     0   :  { %7 = vsyncpa [#allocation3], 0  ;;  %s244_s0 = inlined_call_operand.hbm [shape: f32[16,128], index: 0, kind: input, shape index: {}]   ;;  %s245_s1 = inlined_call_operand.hbm [shape: f32[16,128], index: 1, kind: input, shape index: {}]   ;;  %s246_s2 = inlined_call_operand.hbm [shape: f32[1,3,8,128], index: 2, kind: output, shape index: {}]  }
   0x1   :  { %8 = vsyncpa [#allocation6], 0 }
   0x2   :  { %9 = vsyncpa [#allocation4], 0  ;;  %s179_s9 = smov [#allocation2]   ;;  %s107_s13 = scalar_lea.hbm %s244_s0, 256 }
   0x3   :  { %s19_s10 = sshll.u32 %s179_s9, 4  ;;  %p108_p0 = scmp.ne.s32.totalorder %s244_s0, %s107_s13  ;;  %s20_s10 = int_to_ptr.vmem [resolvable:$true] %s19_s10 }
   0x4   :  { %p111_p1 = scmp.lt.u32.totalorder %s107_s13, %s244_s0 }
   0x6   :  { %p113_p2 = pnand %p111_p1, %p108_p0 }
   0x8   :  { %116 = shalt.err (!%p113_p2)
}
   0x9   :  { %s117_s18 = scalar_lea.vmem %s20_s10, 256  ;;  %p122_p4 = scmp.lt.s32.totalorder %s20_s10, %s20_s10 }
   0xa   :  { %p118_p3 = scmp.ne.s32.totalorder %s20_s10, %s117_s18  ;;  %p123_p5 = scmp.lt.s32.totalorder %s117_s18, %s117_s18 }
   0xc   :  { %p124_p6 = por %p123_p5, %p122_p4 }
   0xe   :  { %p125_p7 = pnand %p124_p6, %p118_p3 }
  0x10   :  { %128 = shalt.err (!%p125_p7)
}
  0x11   :  { %s180_s19 = smov 128   ;;  %s181_s20 = smov 8  }
  0x12   :  { %25 = dma.hbm_to_vmem [thread:$0]  %s244_s0, 256, %s20_s10, [#allocation3], %s180_s19, %s180_s19, %s181_s20  }
  0x13   :  { %s182_s23 = smov [#allocation5]   ;;  %s129_s27 = scalar_lea.hbm %s245_s1, 256 }
  0x14   :  { %s35_s24 = sshll.u32 %s182_s23, 4  ;;  %p130_p8 = scmp.ne.s32.totalorder %s245_s1, %s129_s27  ;;  %s36_s24 = int_to_ptr.vmem [resolvable:$true] %s35_s24 }
  0x15   :  { %p133_p9 = scmp.lt.u32.totalorder %s129_s27, %s245_s1 }
  0x17   :  { %p135_p10 = pnand %p133_p9, %p130_p8 }
  0x19   :  { %138 = shalt.err (!%p135_p10)
}
  0x1a   :  { %s139_s4 = scalar_lea.vmem %s36_s24, 256  ;;  %p144_p12 = scmp.lt.s32.totalorder %s36_s24, %s36_s24 }
  0x1b   :  { %p140_p11 = scmp.ne.s32.totalorder %s36_s24, %s139_s4  ;;  %p145_p13 = scmp.lt.s32.totalorder %s139_s4, %s139_s4 }
  0x1d   :  { %p146_p0 = por %p145_p13, %p144_p12 }
  0x1f   :  { %p147_p1 = pnand %p146_p0, %p140_p11 }
  0x21   :  { %150 = shalt.err (!%p147_p1)
}
  0x22   :  { %41 = dma.hbm_to_vmem [thread:$0]  %s245_s1, 256, %s36_s24, [#allocation6], %s180_s19, %s180_s19, %s181_s20  }
  0x23   :  { %173 = dma.done.wait [#allocation3], 256  }
  0x24   :  { %174 = vsyncadd [#allocation3], 4294967040 }
  0x25   :  { %175 = dma.done.wait [#allocation6], 256  }
  0x26   :  { %176 = vsyncadd [#allocation6], 4294967040  ;;  %v59_v0 = vld [vmem:[#allocation5] sm:$0xff]  ;;  %v60_v1 = vld [vmem:[#allocation5 + $0x8] sm:$0xff]  ;;  %s183_s6 = smov [#allocation7]  }
  0x27   :  { %v61_v2 = vld [vmem:[#allocation2] sm:$0xff]  ;;  %v62_v3 = vld [vmem:[#allocation2 + $0x8] sm:$0xff]  ;;  %v73_v5 = vadd.f32 %v60_v1, %v59_v0  ;;  %v78_v6 = vmul.f32 %v59_v0, %v59_v0  ;;  %v79_v7 = vmul.f32 %v60_v1, %v60_v1  ;;  %s88_s7 = sshll.u32 %s183_s6, 4  ;;  %s89_s7 = int_to_ptr.vmem [resolvable:$true] %s88_s7 }
  0x28   :  { %v63_v4 = vsub.f32 %v59_v0, %v61_v2  ;;  %v64_v8 = vsub.f32 %v60_v1, %v62_v3  ;;  %s151_s1 = scalar_lea.vmem %s89_s7, 384  ;;  %p156_p3 = scmp.lt.s32.totalorder %s89_s7, %s89_s7 }
  0x29   :  { %v80_v10 = vadd.f32 %v79_v7, %v78_v6  ;;  %75 = vst [vmem:[#allocation7 + $0x8] sm:$0xff] %v73_v5  ;;  %p152_p2 = scmp.ne.s32.totalorder %s89_s7, %s151_s1  ;;  %p157_p4 = scmp.lt.s32.totalorder %s151_s1, %s151_s1 }
  0x2a   :  { %v66_v9 = vmul.f32 %v63_v4, %v63_v4  ;;  %v67_v11 = vmul.f32 %v64_v8, %v64_v8 }
  0x2b   :  { %82 = vst [vmem:[#allocation7 + $0x10] sm:$0xff] %v80_v10  ;;  %p158_p5 = por %p157_p4, %p156_p3 }
  0x2c   :  { %v68_v12 = vadd.f32 %v67_v11, %v66_v9 }
  0x2d   :  { %p159_p6 = pnand %p158_p5, %p152_p2 }
  0x2e   :  { %70 = vst [vmem:[#allocation7] sm:$0xff] %v68_v12 }
  0x2f   :  { %162 = shalt.err (!%p159_p6)
}
  0x30   :  { %s163_s10 = scalar_lea.hbm %s246_s2, 384 }
  0x31   :  { %p164_p7 = scmp.ne.s32.totalorder %s246_s2, %s163_s10  ;;  %p167_p8 = scmp.lt.u32.totalorder %s163_s10, %s246_s2 }
  0x33   :  { %p169_p9 = pnand %p167_p8, %p164_p7 }
  0x35   :  { %172 = shalt.err (!%p169_p9)
}
  0x36   :  { %94 = dma.vmem_to_hbm [thread:$0]  %s89_s7, 384, %s246_s2, [#allocation4], %s180_s19, %s180_s19, %s181_s20  }
  0x37   :  { %177 = dma.done.wait [#allocation4], 384  }
  0x38   :  { %178 = vsyncadd [#allocation4], 4294966912 }
  0x39   :  { %98 = vsyncpa [#allocation3], 1 }
  0x3a   :  { %99 = vsyncpa [#allocation6], 1 }
  0x3b   :  { %100 = vsyncpa [#allocation4], 1 }

</bundles_post_ra>
